<compile_context>
chip_gen: v5e
topology: v5e:2x2
jax: 0.10.0
libtpu: 0.0.40
codegen_flags: <defaults>
</compile_context>

<pallas_src>
import jax
import jax.numpy as jnp
from jax.experimental import pallas as pl
from jax.experimental.pallas import tpu as pltpu


# ---------------------------------------------------------------------------
# Kernel
# ---------------------------------------------------------------------------
def pima_mlp_kernel(xT_ref, w1_ref, b1_ref, w2_ref, b2_ref, w3_ref, b3_ref,
                    o_ref):
    """Fused Linear->ReLU->Linear->ReLU->Linear->Sigmoid, batch on lanes."""
    # (8, TILE_B) activations on the single-pass bf16 MXU path.
    xT = xT_ref[...].astype(jnp.bfloat16)

    # hidden1 + ReLU: (12, 8) @ (8, TB) -> (12, TB), f32 accumulation.
    h1 = jnp.dot(w1_ref[...], xT, preferred_element_type=jnp.float32)
    h1 = jnp.maximum(h1 + b1_ref[...], 0.0)

    # hidden2 + ReLU: (8, 12) @ (12, TB) -> (8, TB).
    h2 = jnp.dot(w2_ref[...], h1.astype(jnp.bfloat16),
                 preferred_element_type=jnp.float32)
    h2 = jnp.maximum(h2 + b2_ref[...], 0.0)

    # output + Sigmoid: (1, 8) @ (8, TB) -> (1, TB)  (lane-dense store).
    z = jnp.dot(w3_ref[...], h2.astype(jnp.bfloat16),
                preferred_element_type=jnp.float32)
    z = z + b3_ref[...]
    # sigmoid(z) = 1 / (1 + exp(-z)):  exp on the EUP, reciprocal on the EUP
    # (approx) instead of a VPU divide.  exp overflow -> inf -> 0, underflow
    # -> 0 -> 1, so the tails are well behaved.
    o_ref[...] = pl.reciprocal(1.0 + jnp.exp(-z), approx=True).astype(o_ref.dtype)


# ---------------------------------------------------------------------------
# Generation-aware tiling / VMEM budget
# ---------------------------------------------------------------------------
def _tpu_budget():
    """Returns (tile_b cap, vmem_limit_bytes), derived from this chip's VMEM."""
    MIB = 1024 * 1024
    try:
        vmem_phys = int(pltpu.get_tpu_info().vmem_capacity_bytes)
    except Exception:
        vmem_phys = 64 * MIB            # conservative fallback (v7x per-TC)
    # Leave headroom for compiler scratch; 48 MiB on v7x, 96 MiB on v5e/v6e.
    vmem_limit = max(32 * MIB, min(vmem_phys - 16 * MIB, 96 * MIB))
    # Live VMEM per lane column: double-buffered f32 input (2*8*4) + output
    # (2*1*4) + f32/bf16 intermediates (h1, h2, casts) ~= 240 B/column.
    cap = (vmem_limit // 240) // 128 * 128
    cap = int(min(cap, 128 * 1024))     # ~128K lanes already sits at roofline
    return cap, int(vmem_limit)


# ---------------------------------------------------------------------------
# Wrappers
# ---------------------------------------------------------------------------
def pima_classifier_forward_t(xT, params, *, tile_b=None, min_grid_steps=8):
    """Primary entry point: feature-major input.

    xT: (8, B) float32 or bfloat16 (batch on the trailing / lane axis).
    Returns (1, B) float32 probabilities.  No wrapper-side transpose or
    pad-to-tile copies; ragged batches use Pallas partial-block masking.
    """
    w1, b1, w2, b2, w3, b3 = params
    feat, B = xT.shape
    assert feat == 8, f"expected 8 input features, got {feat}"

    cap, vmem_limit = _tpu_budget()

    # ---- tile size selection ------------------------------------------------
    if tile_b is None:
        tile_b = cap
    tile_b = max(128, (int(tile_b) // 128) * 128)        # multiple of 128
    tile_b = min(tile_b, cap)                            # fits VMEM budget
    # Keep >= min_grid_steps steps when the batch allows it (pipelining depth,
    # megacore sharding on v7x), and never exceed the (128-rounded) batch.
    depth_cap = max(128, (B // max(1, min_grid_steps)) // 128 * 128)
    tile_b = min(tile_b, depth_cap, max(128, pl.cdiv(B, 128) * 128))

    # Tiny batches (< 128): pad once to one full lane tile (negligible copy);
    # batches >= 128 are fed as-is and ragged tails are masked by Pallas.
    padded_b = B
    if B < 128:
        xT = jnp.pad(xT, ((0, 0), (0, 128 - B)))
        padded_b = 128

    grid = (pl.cdiv(padded_b, tile_b),)

    # Weights on the single-pass bf16 MXU path (cast once, tiny arrays);
    # biases stay f32 for the f32 accumulator adds.
    w1b, w2b, w3b = (w.astype(jnp.bfloat16) for w in (w1, w2, w3))

    def const(arr):  # VMEM-resident across all grid steps
        return pl.BlockSpec(arr.shape, lambda i: (0, 0))

    out = pl.pallas_call(
        pima_mlp_kernel,
        out_shape=jax.ShapeDtypeStruct((1, padded_b), jnp.float32),
        grid=grid,
        in_specs=[
            pl.BlockSpec((8, tile_b), lambda i: (0, i)),   # x^T batch tile
            const(w1b), const(b1),
            const(w2b), const(b2),
            const(w3b), const(b3),
        ],
        out_specs=pl.BlockSpec((1, tile_b), lambda i: (0, i)),
        compiler_params=pltpu.CompilerParams(
            dimension_semantics=("parallel",),
            vmem_limit_bytes=vmem_limit,
        ),
    )(xT, w1b, b1, w2b, b2, w3b, b3)

    if padded_b != B:
        out = out[:, :B]
    return out


def pima_classifier_forward(x, params, **kwargs):
    """Row-major (PyTorch layout) convenience wrapper.

    x: (B, 8).  Returns (B, 1) probabilities.  Note: the transpose here is an
    extra HBM round trip; large-batch callers should use the feature-major
    entry point `pima_classifier_forward_t` directly.
    """
    return pima_classifier_forward_t(x.T, params, **kwargs).T


# ---------------------------------------------------------------------------
# Parameters & reference
# ---------------------------------------------------------------------------
def init_params(key):
    """Deterministic init, PyTorch Linear (out, in) convention.

    Biases are (out, 1) columns so they broadcast over the lane/batch axis.
    """
    k1, k2, k3, k4, k5, k6 = jax.random.split(key, 6)

    def uni(k, shape, fan_in):
        bound = 1.0 / jnp.sqrt(jnp.float32(fan_in))
        return jax.random.uniform(k, shape, jnp.float32, -bound, bound)

    w1 = uni(k1, (12, 8), 8)
    b1 = uni(k2, (12, 1), 8)
    w2 = uni(k3, (8, 12), 12)
    b2 = uni(k4, (8, 1), 12)
    w3 = uni(k5, (1, 8), 8)
    b3 = uni(k6, (1, 1), 8)
    return (w1, b1, w2, b2, w3, b3)


def reference_forward(x, params):
    """Pure-JAX f32 reference (row-major, PyTorch semantics)."""
    w1, b1, w2, b2, w3, b3 = params
    h1 = jnp.maximum(x @ w1.T + b1.reshape(1, -1), 0.0)
    h2 = jnp.maximum(h1 @ w2.T + b2.reshape(1, -1), 0.0)
    return jax.nn.sigmoid(h2 @ w3.T + b3.reshape(1, -1))


# ---------------------------------------------------------------------------
# Demo / self-test
# ---------------------------------------------------------------------------
if __name__ == "__main__":
    key = jax.random.PRNGKey(0)
    kx, kp = jax.random.split(key)
    params = init_params(kp)

    # bf16 weights + 8-wide dots => loosened tolerance vs the f32 reference.
    ATOL = 2e-2

    # 1) Feature-major contract, batch multiple of 128 (exact tiles).
    b1_ = 256
    xT1 = jax.random.normal(kx, (8, b1_), jnp.float32)
    out1 = jax.block_until_ready(pima_classifier_forward_t(xT1, params))
    ref1 = reference_forward(xT1.T, params)
    assert out1.shape == (1, b1_), out1.shape
    err1 = jnp.max(jnp.abs(out1[0] - ref1[:, 0]))
    assert jnp.allclose(out1[0], ref1[:, 0], atol=ATOL), f"exact-tile err {err1}"

    # 2) Ragged batch (not a multiple of 128) via the row-major wrapper:
    #    exercises the partial last tile (masked store, dropped OOB columns).
    b2_ = 300
    x2 = jax.random.normal(jax.random.PRNGKey(1), (b2_, 8), jnp.float32)
    out2 = jax.block_until_ready(
        pima_classifier_forward(x2, params, tile_b=128))
    ref2 = reference_forward(x2, params)
    assert out2.shape == (b2_, 1), out2.shape
    err2 = jnp.max(jnp.abs(out2 - ref2))
    assert jnp.allclose(out2, ref2, atol=ATOL), f"ragged-tile err {err2}"

    # 3) Tiny batch (< one lane tile).
    b3_ = 8
    xT3 = jax.random.normal(jax.random.PRNGKey(2), (8, b3_), jnp.float32)
    out3 = jax.block_until_ready(pima_classifier_forward_t(xT3, params))
    ref3 = reference_forward(xT3.T, params)
    assert out3.shape == (1, b3_), out3.shape
    err3 = jnp.max(jnp.abs(out3[0] - ref3[:, 0]))
    assert jnp.allclose(out3[0], ref3[:, 0], atol=ATOL), f"tiny-batch err {err3}"

    # 4) Larger batch with auto tile sizing (grid depth clamp picks tile_b=256).
    b4_ = 2048
    xT4 = jax.random.normal(jax.random.PRNGKey(3), (8, b4_), jnp.float32)
    out4 = jax.block_until_ready(pima_classifier_forward_t(xT4, params))
    ref4 = reference_forward(xT4.T, params)
    assert out4.shape == (1, b4_), out4.shape
    err4 = jnp.max(jnp.abs(out4[0] - ref4[:, 0]))
    assert jnp.allclose(out4[0], ref4[:, 0], atol=ATOL), f"auto-tile err {err4}"

    # 5) bf16 activations (halves input HBM traffic on v6e/v7x).
    out5 = jax.block_until_ready(
        pima_classifier_forward_t(xT1.astype(jnp.bfloat16), params))
    err5 = jnp.max(jnp.abs(out5[0] - ref1[:, 0]))
    assert jnp.allclose(out5[0], ref1[:, 0], atol=5e-2), f"bf16 err {err5}"

    print("KERNEL_OK")
</pallas_src>

<mosaic_0001>
module attributes {stable_mosaic.version = 11 : i64} {
  func.func @pima_mlp_kernel(%arg0: i32, %arg1: memref<8x128xf32, #tpu.memory_space<vmem>>, %arg2: memref<12x8xbf16, #tpu.memory_space<vmem>>, %arg3: memref<12x1xf32, #tpu.memory_space<vmem>>, %arg4: memref<8x12xbf16, #tpu.memory_space<vmem>>, %arg5: memref<8x1xf32, #tpu.memory_space<vmem>>, %arg6: memref<1x8xbf16, #tpu.memory_space<vmem>>, %arg7: memref<1x1xf32, #tpu.memory_space<vmem>>, %arg8: memref<1x128xf32, #tpu.memory_space<vmem>>) attributes {dimension_semantics = [#tpu.dimension_semantics<parallel>], iteration_bounds = array<i64: 2>, scalar_prefetch = 0 : i64, scratch_operands = 0 : i64, tpu.core_type = #tpu.core_type<tc>, window_params = [{transform_indices = @transform_0, window_bounds = array<i64: 8, 128>}, {pipeline_mode = #tpu.pipeline_mode<synchronous>, transform_indices = @transform_1, window_bounds = array<i64: 12, 8>}, {pipeline_mode = #tpu.pipeline_mode<synchronous>, transform_indices = @transform_2, window_bounds = array<i64: 12, 1>}, {pipeline_mode = #tpu.pipeline_mode<synchronous>, transform_indices = @transform_3, window_bounds = array<i64: 8, 12>}, {pipeline_mode = #tpu.pipeline_mode<synchronous>, transform_indices = @transform_4, window_bounds = array<i64: 8, 1>}, {pipeline_mode = #tpu.pipeline_mode<synchronous>, transform_indices = @transform_5, window_bounds = array<i64: 1, 8>}, {pipeline_mode = #tpu.pipeline_mode<synchronous>, transform_indices = @transform_6, window_bounds = array<i64: 1, 1>}, {transform_indices = @transform_7, window_bounds = array<i64: 1, 128>}]} {
    %c0 = arith.constant 0 : index
    %c0_0 = arith.constant 0 : index
    %0 = vector.load %arg1[%c0, %c0_0] : memref<8x128xf32, #tpu.memory_space<vmem>>, vector<8x128xf32>
    %1 = arith.truncf %0 : vector<8x128xf32> to vector<8x128xbf16>
    %c0_1 = arith.constant 0 : index
    %c0_2 = arith.constant 0 : index
    %2 = vector.load %arg2[%c0_1, %c0_2] : memref<12x8xbf16, #tpu.memory_space<vmem>>, vector<12x8xbf16>
    %cst = arith.constant dense<0.000000e+00> : vector<12x128xf32>
    %3 = tpu.matmul %2, %1, %cst {dimension_numbers = #tpu.dot_dimension_numbers<[1], [0], [0], [1], [0, 0, 1, 1], [], []>} : vector<12x8xbf16>, vector<8x128xbf16>, vector<12x128xf32> -> vector<12x128xf32>
    %c0_3 = arith.constant 0 : index
    %c0_4 = arith.constant 0 : index
    %4 = vector.load %arg3[%c0_3, %c0_4] : memref<12x1xf32, #tpu.memory_space<vmem>>, vector<12x1xf32>
    %5 = vector.broadcast %4 : vector<12x1xf32> to vector<12x128xf32>
    %6 = arith.addf %3, %5 : vector<12x128xf32>
    %cst_5 = arith.constant 0.000000e+00 : f32
    %7 = vector.broadcast %cst_5 : f32 to vector<12x128xf32>
    %8 = arith.maximumf %6, %7 : vector<12x128xf32>
    %c0_6 = arith.constant 0 : index
    %c0_7 = arith.constant 0 : index
    %9 = vector.load %arg4[%c0_6, %c0_7] : memref<8x12xbf16, #tpu.memory_space<vmem>>, vector<8x12xbf16>
    %10 = arith.truncf %8 : vector<12x128xf32> to vector<12x128xbf16>
    %cst_8 = arith.constant dense<0.000000e+00> : vector<8x128xf32>
    %11 = tpu.matmul %9, %10, %cst_8 {dimension_numbers = #tpu.dot_dimension_numbers<[1], [0], [0], [1], [0, 0, 1, 1], [], []>} : vector<8x12xbf16>, vector<12x128xbf16>, vector<8x128xf32> -> vector<8x128xf32>
    %c0_9 = arith.constant 0 : index
    %c0_10 = arith.constant 0 : index
    %12 = vector.load %arg5[%c0_9, %c0_10] : memref<8x1xf32, #tpu.memory_space<vmem>>, vector<8x1xf32>
    %13 = vector.broadcast %12 : vector<8x1xf32> to vector<8x128xf32>
    %14 = arith.addf %11, %13 : vector<8x128xf32>
    %cst_11 = arith.constant 0.000000e+00 : f32
    %15 = vector.broadcast %cst_11 : f32 to vector<8x128xf32>
    %16 = arith.maximumf %14, %15 : vector<8x128xf32>
    %c0_12 = arith.constant 0 : index
    %c0_13 = arith.constant 0 : index
    %17 = vector.load %arg6[%c0_12, %c0_13] : memref<1x8xbf16, #tpu.memory_space<vmem>>, vector<1x8xbf16>
    %18 = arith.truncf %16 : vector<8x128xf32> to vector<8x128xbf16>
    %cst_14 = arith.constant dense<0.000000e+00> : vector<1x128xf32>
    %19 = tpu.matmul %17, %18, %cst_14 {dimension_numbers = #tpu.dot_dimension_numbers<[1], [0], [0], [1], [0, 0, 1, 1], [], []>} : vector<1x8xbf16>, vector<8x128xbf16>, vector<1x128xf32> -> vector<1x128xf32>
    %c0_15 = arith.constant 0 : index
    %c0_16 = arith.constant 0 : index
    %20 = vector.load %arg7[%c0_15, %c0_16] : memref<1x1xf32, #tpu.memory_space<vmem>>, vector<1x1xf32>
    %21 = vector.broadcast %20 : vector<1x1xf32> to vector<1x128xf32>
    %22 = arith.addf %19, %21 : vector<1x128xf32>
    %cst_17 = arith.constant 0.000000e+00 : f32
    %23 = vector.broadcast %cst_17 : f32 to vector<1x128xf32>
    %24 = arith.subf %23, %22 : vector<1x128xf32>
    %25 = math.exp %24 : vector<1x128xf32>
    %cst_18 = arith.constant 1.000000e+00 : f32
    %26 = vector.broadcast %cst_18 : f32 to vector<1x128xf32>
    %27 = arith.addf %26, %25 : vector<1x128xf32>
    %28 = tpu.reciprocal %27 {approx = true} : vector<1x128xf32> -> vector<1x128xf32>
    %c0_19 = arith.constant 0 : index
    %c0_20 = arith.constant 0 : index
    %29 = vector.load %arg8[%c0_19, %c0_20] : memref<1x128xf32, #tpu.memory_space<vmem>>, vector<1x128xf32>
    tpu.vector_store %arg8[%c0_19, %c0_20], %28 {strides = array<i32>} : memref<1x128xf32, #tpu.memory_space<vmem>>, vector<1x128xf32>,
    return
  }
  func.func @transform_0(%arg0: i32) -> (i32, i32) {
    %c0_i32 = arith.constant 0 : i32
    %c0_i32_0 = arith.constant 0 : i32
    return %c0_i32, %arg0 : i32, i32
  }
  func.func @transform_1(%arg0: i32) -> (i32, i32) {
    %c0_i32 = arith.constant 0 : i32
    %c0_i32_0 = arith.constant 0 : i32
    %c0_i32_1 = arith.constant 0 : i32
    return %c0_i32, %c0_i32_0 : i32, i32
  }
  func.func @transform_2(%arg0: i32) -> (i32, i32) {
    %c0_i32 = arith.constant 0 : i32
    %c0_i32_0 = arith.constant 0 : i32
    %c0_i32_1 = arith.constant 0 : i32
    return %c0_i32, %c0_i32_0 : i32, i32
  }
  func.func @transform_3(%arg0: i32) -> (i32, i32) {
    %c0_i32 = arith.constant 0 : i32
    %c0_i32_0 = arith.constant 0 : i32
    %c0_i32_1 = arith.constant 0 : i32
    return %c0_i32, %c0_i32_0 : i32, i32
  }
  func.func @transform_4(%arg0: i32) -> (i32, i32) {
    %c0_i32 = arith.constant 0 : i32
    %c0_i32_0 = arith.constant 0 : i32
    %c0_i32_1 = arith.constant 0 : i32
    return %c0_i32, %c0_i32_0 : i32, i32
  }
  func.func @transform_5(%arg0: i32) -> (i32, i32) {
    %c0_i32 = arith.constant 0 : i32
    %c0_i32_0 = arith.constant 0 : i32
    %c0_i32_1 = arith.constant 0 : i32
    return %c0_i32, %c0_i32_0 : i32, i32
  }
  func.func @transform_6(%arg0: i32) -> (i32, i32) {
    %c0_i32 = arith.constant 0 : i32
    %c0_i32_0 = arith.constant 0 : i32
    %c0_i32_1 = arith.constant 0 : i32
    return %c0_i32, %c0_i32_0 : i32, i32
  }
  func.func @transform_7(%arg0: i32) -> (i32, i32) {
    %c0_i32 = arith.constant 0 : i32
    %c0_i32_0 = arith.constant 0 : i32
    return %c0_i32, %arg0 : i32, i32
  }
}

</mosaic_0001>

<bundles_post_ra>
// kernel: tpu_custom_call.1
= control target key start
LH: loop header
LB: loop body
LE: loop exit
PB: predicated region body
PF: predicated region fallthrough
CT: control target
= control target key end

     0   :  { %s732_s0 = inlined_call_operand.vmem [shape: f32[8,256], index: 0, kind: input, shape index: {}]   ;;  %s733_s1 = inlined_call_operand.vmem [shape: bf16[12,8], index: 1, kind: input, shape index: {}]   ;;  %s734_s2 = inlined_call_operand.vmem [shape: f32[12,1], index: 2, kind: input, shape index: {}]   ;;  %s735_s3 = inlined_call_operand.vmem [shape: bf16[8,12], index: 3, kind: input, shape index: {}]   ;;  %s736_s4 = inlined_call_operand.vmem [shape: f32[8,1], index: 4, kind: input, shape index: {}]   ;;  %s737_s5 = inlined_call_operand.vmem [shape: bf16[1,8], index: 5, kind: input, shape index: {}]   ;;  %s738_s6 = inlined_call_operand.<no memory space> [shape: f32[1,1], index: 6, kind: input, shape index: {}]   ;;  %s739_s7 = inlined_call_operand.hbm [shape: f32[1,256], index: 7, kind: output, shape index: {}]  }
   0x1   :  { %v12_v0 = vstv %s738_s6 }
   0x2   :  { %13 = vst [vmem:[#allocation2] sm:$0x1] %v12_v0 }
   0x3   :  { %14 = vsyncpa [#allocation4], 0 }
   0x4   :  { %16 = vsyncpa [#allocation4 + $0x1], 0  ;;  %s622_s26 = smov 0   ;;  %s624_s27 = smov 0  }
   0x5   :  { %s626_s28 = smov 0   ;;  %s628_s29 = smov 0  }
   0x6 LB: > { %s643_s6 = sadd.s32 4294967295, %s576_s29   ;;  %s453_s30 = sadd.s32 4294967294, %s576_s29   ;;  %s576_s29 = sphi %s628_s29, %s745_s29   ;;  %s572_s28 = sphi %s626_s28, %s744_s28   ;;  %s568_s27 = sphi %s624_s27, %s743_s27   ;;  %s564_s26 = sphi %s622_s26, %s742_s26  }
   0x7   : > { %s647_s8 = sadd.s32 1, %s576_s29   ;;  %s181_s9 = sadd.s32 1, %s572_s28 }
   0x8   : > { %s178_s10 = ssub.s32 %s576_s29, %s647_s8  ;;  %p191_p0 = scmp.ne.s32.totalorder %s572_s28, %s568_s27 }
   0x9   : > { %p179_p1 = scmp.eq.s32.totalorder %s178_s10, 0  ;;  %p192_p2 = scmp.eq.s32.totalorder %s643_s6, 1 }
   0xa   : > { %p197_p3 = scmp.ne.s32.totalorder %s568_s27, %s564_s26  ;;  %p198_p4 = scmp.eq.s32.totalorder %s453_s30, 1 }
   0xb   : > { %s658_s11 = scalar_select %p179_p1, %s572_s28, %s181_s9  }
   0xc   : > { %p660_p5 = por %p192_p2, %p191_p0  ;;  %p664_p6 = por %p198_p4, %p197_p3 }
   0xd   : > { %p456_p7 = scmp.ge.s32.totalorder %s576_s29, 1  ;;  %p241_p8 = scmp.lt.s32.totalorder %s576_s29, 3 }
   0xf   : > { %p242_p9 = pnand %p456_p7, %p241_p8 }
  0x10   : > { %p271_p10 = scmp.lt.s32.totalorder (!%p242_p9), %s643_s6, 1  ;;  %s269_s18 = sand.u32 (!%p242_p9), 1, %s568_s27  }
  0x11   : > { %245 = sbr.rel (%p242_p9) target bundleno = 470 (0x1d6), region = 48  ;;  %s394_s21 = scalar_lea.hbm (!%p242_p9), %s739_s7, %s643_s6 }
  0x12   : > { %s270_s22 = scalar_lea.vmem (!%p242_p9), [#allocation3], %s269_s18  ;;  %s398_s24 = sshll.u32 (!%p242_p9), %s394_s21, 4  ;;  %s399_s24 = int_to_ptr.hbm [resolvable:$true] %s398_s24 }
  0x13   : > { %s396_s23 = sshll.u32 (!%p242_p9), %s270_s22, 4  ;;  %s386_s25 = scalar_lea.sflag (!%p242_p9), [#allocation4], %s269_s18  ;;  %s397_s23 = int_to_ptr.vmem [resolvable:$true] %s396_s23 }
  0x14   : > { %s528_s30 = sshra.s32 (!%p242_p9), %s399_s24, 4  ;;  %s529_s30 = int_to_ptr.hbm [resolvable:$true] %s528_s30 }
  0x15   : > { %s530_s9 = scalar_lea.hbm (!%p242_p9), %s529_s30, 1  ;;  %p535_p0 = scmp.lt.s32.totalorder (!%p242_p9), %s529_s30, %s739_s7 }
  0x16   : > { %v280_v1 = vld [vmem:[%s734_s2] sm:$0xff]  ;;  %s272_s16 = scalar_select %p271_p10, %s643_s6, 1  ;;  %v578_v2 = vmov 0   ;;  %vm301_vm0 = vcmask 1043456   ;;  %v281_v7 = vld [vmem:[%s734_s2 + $0x8] sm:$0xf] }
  0x17   : > { %508 = vset.pattern.permute.xlu0 %v578_v2  ;;  %509 = vset.pattern.permute.xlu1 %v578_v2  ;;  %v460_v4 = vld [vmem:[%s733_s1] sm:$0xf]  ;;  %v467_v5 = vld [vmem:[%s733_s1] sm:$0x30]  ;;  %vm297_vm1 = vcmask 64512   ;;  %vm333_vm2 = vcmask 1045504   ;;  %p531_p11 = scmp.ne.s32.totalorder %s529_s30, %s530_s9 }
  0x18   : > { %284 = vperm.xlu0 %508, %v280_v1   ;;  %s457_s17 = sshll.u32 %s272_s16, 3  ;;  %v461_v9 = vor.u32 %v467_v5, %v460_v4  ;;  %v323_v10 = vld [vmem:[%s736_s4] sm:$0xff]  ;;  %vm329_vm3 = vcmask 97280   ;;  %s534_s6 = scalar_lea.hbm %s739_s7, 2 }
  0x19   : > { %s274_s20 = scalar_lea.vmem %s732_s0, %s457_s17  ;;  %326 = vperm.xlu1 %509, %v323_v10   ;;  %v353_v11 = vld [vmem:[#allocation2] sm:$0x1]  ;;  %p532_p12 = pnand %p531_p11, %p660_p5 }
  0x1a   : > { %v276_v3 = vld [vmem:[%s274_s20] sm:$0xff]  ;;  %p536_p1 = scmp.lt.s32.totalorder %s534_s6, %s530_s9 }
  0x1b   : > { %v277_v6 = vpack.c.bf16 %v276_v3, %v276_v3  ;;  %v321_v22 = vld [vmem:[%s735_s3] sm:$0xf]  ;;  %p533_p13 = pneg %p532_p12 }
  0x1c   : > { %v351_v30 = vld [vmem:[%s737_s5] sm:$0x1]  ;;  %p537_p2 = por %p536_p1, %p535_p0 }
  0x1d   : > { %v303_v8 = vsel %vm301_vm0, %v277_v6, 0 }
  0x1e   : > { %312 = vmatpush.bf16.msra.mxu0 %v303_v8  ;;  %p538_p3 = pnand %p537_p2, %p533_p13 }
  0x20   : > { %289 = vperm.xlu0 %508, %v281_v7  }
  0x21   : > { %462 = vmatmul.msk.bf16.vlgmr.msra.gmra.mxu0 %vm297_vm1, %v461_v9  ;;  %356 = vperm.xlu1 %509, %v353_v11  }
  0x8a   : > { %v285_v12 = vpop.permute.xlu0 %284 }
  0x8b   : > { %v327_v23 = vpop.permute.xlu1 %326 }
  0x92   : > { %v290_v15 = vpop.permute.xlu0 %289 }
  0x93   : > { %v357_v31 = vpop.permute.xlu1 %356 }
  0x94   : > { %v359_v32 = vperm.slane %v357_v31, 0 }
  0x9e   : > { %v314_v13 = vpop.f32.mrf.mxu0 }
  0x9f   : > { %v315_v14 = vadd.f32 %v314_v13, %v285_v12 }
  0xa1   : > { %v319_v18 = vmax.f32 %v315_v14, 0.0 }
  0xa6   : > { %v316_v16 = vpop.f32.mrf.mxu0 }
  0xa7   : > { %v317_v17 = vadd.f32 %v316_v16, %v290_v15 }
  0xa9   : > { %v320_v19 = vmax.f32 %v317_v17, 0.0 }
  0xab   : > { %v322_v20 = vpack.c.bf16 %v320_v19, %v319_v18 }
  0xad   : > { %v335_v21 = vsel %vm333_vm2, %v322_v20, 0 }
  0xae   : > { %344 = vmatpush.bf16.msra.mxu1 %v335_v21 }
  0xb1   : > { %463 = vmatmul.msk.bf16.vlgmr.msra.gmra.mxu1 %vm329_vm3, %v321_v22 }
 0x12e   : > { %v346_v24 = vpop.f32.mrf.mxu1 }
 0x12f   : > { %v347_v25 = vadd.f32 %v346_v24, %v327_v23 }
 0x131   : > { %v350_v26 = vmax.f32 %v347_v25, 0.0 }
 0x133   : > { %v352_v27 = vpack.c.bf16 %v350_v26, %v350_v26 }
 0x135   : > { %v364_v28 = vsel %vm301_vm0, %v352_v27, 0 }
 0x136   : > { %v348_v29 = vpop.f32.mrf.mxu1  ;;  %373 = vmatpush.bf16.msra.mxu2 %v364_v28 }
 0x139   : > { %464 = vmatmul.msk.bf16.vlgmr.msra.gmra.mxu2 %vm297_vm1, %v351_v30 }
 0x1bc   : > { %v375_v33 = vpop.f32.mrf.mxu2 }
 0x1bd   : > { %v376_v34 = vadd.f32 %v375_v33, %v359_v32 }
 0x1bf   : > { %v379_v35 = vsub.f32 0.0, %v376_v34 }
 0x1c1   : > { %v380_v36 = vmul.f32 1.442695, %v379_v35 }
 0x1c3   : > { %510 = vpow2.f32 %v380_v36 }
 0x1c4   : > { %v377_v37 = vpop.f32.mrf.mxu2 }
 0x1c9   : > { %v511_v38 = vpop.eup %510 }
 0x1ca   : > { %v382_v39 = vadd.f32 1.0, %v511_v38 }
 0x1cc   : > { %512 = vrcp.f32 %v382_v39 }
 0x1d2   : > { %v513_v40 = vpop.eup %512 }
 0x1d3   : > { %384 = vst [vmem:[%s270_s22] sm:$0x1] %v513_v40 }
 0x1d4   : > { %541 = shalt.err (!%p538_p3)
}
 0x1d5   : > { %468 = dma.vmem_to_hbm [thread:$0]  (%p660_p5), %s397_s23, 16, %s399_s24, %s386_s25  }
 0x1d6 PF: > { %p474_p4 = scmp.ge.s32.totalorder %s576_s29, 2  ;;  %s410_s17 = sand.u32 1, %s564_s26  }
 0x1d7   : > { %s411_s18 = scalar_lea.sflag [#allocation4], %s410_s17 }
 0x1d8   : > { %p471_p7 = pnand %p474_p4, %p664_p6 }
 0x1da   : > { %p472_p8 = pneg %p471_p7 }
 0x1dc   : > { %559 = dma.done.wait (%p472_p8), %s411_s18, 16  }
 0x1dd   : > { %561 = vsyncadd (%p472_p8), %s411_s18, 4294967280  ;;  %p19_p9 = scmp.ge.s32.totalorder %s647_s8, 4   ;;  %s742_s26 = smov %s568_s27 }
 0x1de   : > { %s743_s27 = smov %s572_s28  ;;  %s744_s28 = smov %s658_s11 }
 0x1df   : > { %s745_s29 = smov %s647_s8  ;;  %21 = sbr.rel (!%p19_p9) target bundleno = 6 (0x6), region = 83 }
 0x1e4   :  { %416 = vsyncpa [#allocation4], 1 }
 0x1e5   :  { %418 = vsyncpa [#allocation4 + $0x1], 1 }

</bundles_post_ra>
